<compile_context>
chip_gen: v5e
topology: v5e:2x2
jax: 0.10.0
libtpu: 0.0.40
codegen_flags: <defaults>
</compile_context>

<pallas_src>
import functools

import jax
import jax.numpy as jnp
from jax.experimental import pallas as pl
from jax.experimental.pallas import tpu as pltpu


def _prenorm_ln_kernel(x_ref, gamma_ref, o_ref, *, eps, inv_c, act=None):
    """One grid step normalizes a (C, Ts) slab over its channel (sublane) axis.

    I/O stays in the caller's dtype; all math is done in f32 in VMEM/vregs.
    """
    x = x_ref[0].astype(jnp.float32)                          # (C, Ts) f32
    mean = jnp.sum(x, axis=0, keepdims=True) * inv_c          # (1, Ts)
    xc = x - mean
    var = jnp.sum(xc * xc, axis=0, keepdims=True) * inv_c     # unbiased=False (biased var)
    inv = jax.lax.rsqrt(var + eps)
    y = xc * inv * gamma_ref[...]                             # gamma (C, 1) broadcasts over lanes
    if act is not None:                                       # fused elementwise fn epilogue
        y = act(y)
    o_ref[0] = y.astype(o_ref.dtype)                          # lane-dense store in native dtype


def _pick_spatial_tile(s, c, itemsize, batch, *,
                       target_block_bytes=2 << 20,            # ~2 MiB per x block
                       max_pipeline_bytes=12 << 20):          # 2*(in+out) double-buffer budget
    """Lane-tile size: multiple of 128, sized by bytes, never the unbounded full extent."""
    bytes_per_lane = max(c * itemsize, 1)
    ts = target_block_bytes // bytes_per_lane
    ts = min(ts, max_pipeline_bytes // (4 * bytes_per_lane))  # in+out, double-buffered
    ts = max(128, (ts // 128) * 128)
    if s <= ts:
        if batch >= 2 or s < 256:
            return s                                          # full extent fits comfortably
        # batch == 1: split so a 2-TC chip (v7x) still gets >= 2 balanced grid steps.
        half = (((s + 1) // 2) + 127) // 128 * 128
        return half if half < s else s
    return ts


def pre_norm(x, gamma, fn=None, *, eps=1e-5, fuse_fn=False, **fn_kwargs):
    """PreNorm.forward: channel LayerNorm (Pallas kernel) followed by fn.

    x:       (B, C, F, H, W), any float dtype (I/O stays in this dtype; math in f32)
    gamma:   any array reshapeable to (C,)  (the module's (1, C, 1, 1, 1) parameter)
    fn:      the wrapped callable. If `fuse_fn=True` it must be elementwise and is fused
             into the kernel epilogue; otherwise it is applied to the kernel output.
    """
    B, C, F, H, W = x.shape
    S = F * H * W
    itemsize = jnp.dtype(x.dtype).itemsize
    ts = _pick_spatial_tile(S, C, itemsize, B)
    n_s = pl.cdiv(S, ts)

    x3 = x.reshape(B, C, S)                                   # free reshape, no dtype cast
    g = jnp.reshape(gamma, (C, 1)).astype(jnp.float32)        # tiny resident VMEM block

    act = None
    if fn is not None and fuse_fn:
        act = (lambda v: fn(v, **fn_kwargs)) if fn_kwargs else fn

    kernel = functools.partial(_prenorm_ln_kernel, eps=eps, inv_c=1.0 / C, act=act)

    y3 = pl.pallas_call(
        kernel,
        out_shape=jax.ShapeDtypeStruct((B, C, S), x.dtype),   # native-dtype writeback
        grid_spec=pltpu.PrefetchScalarGridSpec(
            num_scalar_prefetch=0,
            grid=(B, n_s),
            in_specs=[
                pl.BlockSpec((1, C, ts), lambda b, s: (b, 0, s)),   # x slab (ragged tail OK)
                pl.BlockSpec((C, 1), lambda b, s: (0, 0)),          # gamma (resident)
            ],
            out_specs=pl.BlockSpec((1, C, ts), lambda b, s: (b, 0, s)),
        ),
        compiler_params=pltpu.CompilerParams(
            dimension_semantics=("parallel", "parallel"),     # lets v7x shard across its 2 TCs
        ),
    )(x3, g)

    y = y3.reshape(B, C, F, H, W)
    if fn is None or fuse_fn:
        return y
    # TODO(synk): non-elementwise wrapped sub-modules (attention/conv/...) are applied as a
    # plain JAX callable on the kernel output rather than being fused into the Pallas kernel.
    return fn(y, **fn_kwargs)


def _reference(x, gamma, fn=None, *, eps=1e-5):
    """Pure-JAX reference mirroring the PyTorch PreNorm/LayerNorm forward (f32)."""
    mean = jnp.mean(x, axis=1, keepdims=True)
    var = jnp.mean((x - mean) ** 2, axis=1, keepdims=True)    # torch.var(..., unbiased=False)
    y = (x - mean) / jnp.sqrt(var + eps) * jnp.reshape(gamma, (1, -1, 1, 1, 1))
    return y if fn is None else fn(y)


if __name__ == "__main__":
    key = jax.random.PRNGKey(0)
    kx, kg = jax.random.split(key)

    # Small video-shaped input (b c f h w), consistent with the super-res U-Net blocks.
    B, C, F, H, W = 2, 4, 4, 16, 16
    x = jax.random.normal(kx, (B, C, F, H, W), dtype=jnp.float32)
    # LayerNorm initializes gamma to ones; perturb it to exercise the scale path.
    gamma = 1.0 + 0.1 * jax.random.normal(kg, (1, C, 1, 1, 1), dtype=jnp.float32)

    fn = jax.nn.gelu   # elementwise stand-in for the arbitrary wrapped module -> fused epilogue

    # f32 path (matches the PyTorch module's default dtype), gelu fused into the kernel.
    out = pre_norm(x, gamma, fn, fuse_fn=True)
    out = jax.block_until_ready(out)
    ref = _reference(x, gamma, fn)
    assert out.shape == (B, C, F, H, W)
    assert jnp.allclose(out, ref, atol=1e-5, rtol=1e-5), "f32 mismatch vs reference"

    # bf16 path exercises native-dtype I/O (half the HBM bytes); compare loosely vs f32 ref.
    x_bf = x.astype(jnp.bfloat16)
    out_bf = jax.block_until_ready(pre_norm(x_bf, gamma, fn, fuse_fn=True))
    assert out_bf.dtype == jnp.bfloat16
    ref_bf = _reference(x_bf.astype(jnp.float32), gamma, fn)
    assert jnp.allclose(out_bf.astype(jnp.float32), ref_bf, atol=5e-2, rtol=5e-2), \
        "bf16 mismatch vs reference"

    print("KERNEL_OK")
</pallas_src>

<mosaic_0001>
module attributes {stable_mosaic.version = 11 : i64} {
  func.func @_prenorm_ln_kernel(%arg0: i32, %arg1: i32, %arg2: memref<1x4x1024xf32, #tpu.memory_space<vmem>>, %arg3: memref<4x1xf32, #tpu.memory_space<vmem>>, %arg4: memref<1x4x1024xf32, #tpu.memory_space<vmem>>) attributes {dimension_semantics = [#tpu.dimension_semantics<parallel>, #tpu.dimension_semantics<parallel>], iteration_bounds = array<i64: 2, 1>, scalar_prefetch = 0 : i64, scratch_operands = 0 : i64, tpu.core_type = #tpu.core_type<tc>, window_params = [{transform_indices = @transform_0, window_bounds = array<i64: 1, 4, 1024>}, {pipeline_mode = #tpu.pipeline_mode<synchronous>, transform_indices = @transform_1, window_bounds = array<i64: 4, 1>}, {transform_indices = @transform_2, window_bounds = array<i64: 1, 4, 1024>}]} {
    %c0 = arith.constant 0 : index
    %c0_0 = arith.constant 0 : index
    %c0_1 = arith.constant 0 : index
    %0 = vector.load %arg2[%c0, %c0_0, %c0_1] : memref<1x4x1024xf32, #tpu.memory_space<vmem>>, vector<1x4x1024xf32>
    %1 = vector.shape_cast %0 : vector<1x4x1024xf32> to vector<4x1024xf32>
    %cst = arith.constant dense<0.000000e+00> : vector<1024xf32>
    %2 = vector.multi_reduction <add>, %1, %cst [0] : vector<4x1024xf32> to vector<1024xf32>
    %3 = vector.shape_cast %2 : vector<1024xf32> to vector<1x1024xf32>
    %cst_2 = arith.constant 2.500000e-01 : f32
    %4 = vector.broadcast %cst_2 : f32 to vector<1x1024xf32>
    %5 = arith.mulf %3, %4 : vector<1x1024xf32>
    %6 = vector.broadcast %5 : vector<1x1024xf32> to vector<4x1024xf32>
    %7 = arith.subf %1, %6 : vector<4x1024xf32>
    %8 = arith.mulf %7, %7 : vector<4x1024xf32>
    %cst_3 = arith.constant dense<0.000000e+00> : vector<1024xf32>
    %9 = vector.multi_reduction <add>, %8, %cst_3 [0] : vector<4x1024xf32> to vector<1024xf32>
    %10 = vector.shape_cast %9 : vector<1024xf32> to vector<1x1024xf32>
    %cst_4 = arith.constant 2.500000e-01 : f32
    %11 = vector.broadcast %cst_4 : f32 to vector<1x1024xf32>
    %12 = arith.mulf %10, %11 : vector<1x1024xf32>
    %cst_5 = arith.constant 9.99999974E-6 : f32
    %13 = vector.broadcast %cst_5 : f32 to vector<1x1024xf32>
    %14 = arith.addf %12, %13 : vector<1x1024xf32>
    %15 = math.rsqrt %14 : vector<1x1024xf32>
    %16 = vector.broadcast %15 : vector<1x1024xf32> to vector<4x1024xf32>
    %17 = arith.mulf %7, %16 : vector<4x1024xf32>
    %c0_6 = arith.constant 0 : index
    %c0_7 = arith.constant 0 : index
    %18 = vector.load %arg3[%c0_6, %c0_7] : memref<4x1xf32, #tpu.memory_space<vmem>>, vector<4x1xf32>
    %19 = vector.broadcast %18 : vector<4x1xf32> to vector<4x1024xf32>
    %20 = arith.mulf %17, %19 : vector<4x1024xf32>
    %21 = arith.mulf %20, %20 : vector<4x1024xf32>
    %22 = arith.mulf %20, %21 : vector<4x1024xf32>
    %cst_8 = arith.constant 4.471500e-02 : f32
    %23 = vector.broadcast %cst_8 : f32 to vector<4x1024xf32>
    %24 = arith.mulf %23, %22 : vector<4x1024xf32>
    %25 = arith.addf %20, %24 : vector<4x1024xf32>
    %cst_9 = arith.constant 0.797884583 : f32
    %26 = vector.broadcast %cst_9 : f32 to vector<4x1024xf32>
    %27 = arith.mulf %26, %25 : vector<4x1024xf32>
    %28 = math.tanh %27 : vector<4x1024xf32>
    %cst_10 = arith.constant 1.000000e+00 : f32
    %29 = vector.broadcast %cst_10 : f32 to vector<4x1024xf32>
    %30 = arith.addf %29, %28 : vector<4x1024xf32>
    %cst_11 = arith.constant 5.000000e-01 : f32
    %31 = vector.broadcast %cst_11 : f32 to vector<4x1024xf32>
    %32 = arith.mulf %31, %30 : vector<4x1024xf32>
    %33 = arith.mulf %20, %32 : vector<4x1024xf32>
    %c0_12 = arith.constant 0 : index
    %c0_13 = arith.constant 0 : index
    %c0_14 = arith.constant 0 : index
    %34 = vector.load %arg4[%c0_12, %c0_13, %c0_14] : memref<1x4x1024xf32, #tpu.memory_space<vmem>>, vector<1x4x1024xf32>
    %35 = vector.shape_cast %34 : vector<1x4x1024xf32> to vector<4x1024xf32>
    %36 = vector.shape_cast %33 : vector<4x1024xf32> to vector<1x4x1024xf32>
    tpu.vector_store %arg4[%c0_12, %c0_13, %c0_14], %36 {strides = array<i32>} : memref<1x4x1024xf32, #tpu.memory_space<vmem>>, vector<1x4x1024xf32>,
    return
  }
  func.func @transform_0(%arg0: i32, %arg1: i32) -> (i32, i32, i32) {
    %c0_i32 = arith.constant 0 : i32
    %c0_i32_0 = arith.constant 0 : i32
    return %arg0, %c0_i32, %arg1 : i32, i32, i32
  }
  func.func @transform_1(%arg0: i32, %arg1: i32) -> (i32, i32) {
    %c0_i32 = arith.constant 0 : i32
    %c0_i32_0 = arith.constant 0 : i32
    %c0_i32_1 = arith.constant 0 : i32
    return %c0_i32, %c0_i32_0 : i32, i32
  }
  func.func @transform_2(%arg0: i32, %arg1: i32) -> (i32, i32, i32) {
    %c0_i32 = arith.constant 0 : i32
    %c0_i32_0 = arith.constant 0 : i32
    return %arg0, %c0_i32, %arg1 : i32, i32, i32
  }
}

</mosaic_0001>

<bundles_post_ra>
// kernel: tpu_custom_call.1
= control target key start
LH: loop header
LB: loop body
LE: loop exit
PB: predicated region body
PF: predicated region fallthrough
CT: control target
= control target key end

     0   :  { %7 = vsyncpa [#allocation3], 0  ;;  %s1238_s0 = inlined_call_operand.hbm [shape: f32[2,4,1024], index: 0, kind: input, shape index: {}]   ;;  %s1239_s1 = inlined_call_operand.vmem [shape: f32[4,1], index: 1, kind: input, shape index: {}]   ;;  %s1240_s2 = inlined_call_operand.hbm [shape: f32[2,4,1024], index: 2, kind: output, shape index: {}]  }
   0x1   :  { %9 = vsyncpa [#allocation3 + $0x1], 0 }
   0x2   :  { %10 = vsyncpa [#allocation4], 0 }
   0x3   :  { %12 = vsyncpa [#allocation4 + $0x1], 0  ;;  %s903_s9 = smov 0   ;;  %s905_s10 = smov 0  }
   0x4   :  { %s907_s11 = smov 0   ;;  %s909_s12 = smov 0  }
   0x5   :  { %s911_s13 = smov 0   ;;  %s913_s14 = smov 0  }
   0x6 LB: > { %s666_s15 = sadd.s32 4294967295, %s884_s14   ;;  %s667_s16 = sadd.s32 4294967294, %s884_s14   ;;  %s884_s14 = sphi %s913_s14, %s18_s14   ;;  %s880_s13 = sphi %s911_s13, %s1268_s13   ;;  %s876_s12 = sphi %s909_s12, %s1267_s12   ;;  %s872_s11 = sphi %s907_s11, %s1266_s11   ;;  %s868_s10 = sphi %s905_s10, %s1265_s10   ;;  %s864_s9 = sphi %s903_s9, %s1264_s9  }
   0x7   : > { %s30_s17 = sadd.s32 1, %s880_s13  ;;  %s39_s18 = sadd.s32 1, %s872_s11 }
   0x8   : > { %p32_p0 = scmp.ge.s32.totalorder %s30_s17, 2  ;;  %p46_p1 = scmp.ne.s32.totalorder %s872_s11, %s868_s10 }
   0x9   : > { %p47_p2 = scmp.eq.s32.totalorder %s884_s14, 0  ;;  %p52_p3 = scmp.ne.s32.totalorder %s868_s10, %s864_s9 }
   0xa   : > { %s1270_s17 = smov (%p32_p0, %s30_s17), 0  ;;  %p53_p5 = scmp.eq.s32.totalorder %s666_s15, 0 }
   0xb   : > { %p944_p4 = por %p47_p2, %p46_p1  ;;  %s34_s20 = ssub.s32 %s880_s13, %s1270_s17 }
   0xc   : > { %p99_p6 = scmp.eq.s32.totalorder %s666_s15, 1  ;;  %p37_p7 = scmp.eq.s32.totalorder %s34_s20, 0 }
   0xd   : > { %p950_p8 = por %p53_p5, %p52_p3  ;;  %p105_p10 = scmp.eq.s32.totalorder %s667_s16, 1 }
   0xe   : > { %p954_p9 = por %p99_p6, %p46_p1  ;;  %p669_p12 = scmp.ge.s32.totalorder %s884_s14, 2 }
   0xf   : > { %s959_s23 = scalar_select %p37_p7, %s872_s11, %s39_s18  }
  0x10   : > { %p961_p11 = por %p105_p10, %p52_p3  ;;  %p695_p13 = scmp.lt.s32.totalorder %s884_s14, 2 }
  0x11   : > { %s128_s25 = sand.u32 1, %s872_s11   ;;  %s681_s27 = sshll.u32 %s880_s13, 5 }
  0x12   : > { %s670_s26 = sshll.u32 %s128_s25, 5  ;;  %s139_s30 = scalar_lea.hbm %s1238_s0, %s681_s27 }
  0x13   : > { %s132_s3 = scalar_lea.vmem [#allocation2], %s670_s26  ;;  %s141_s5 = sshll.u32 %s139_s30, 4  ;;  %s142_s5 = int_to_ptr.hbm [resolvable:$true] %s141_s5 }
  0x14   : > { %s143_s4 = sshll.u32 %s132_s3, 4  ;;  %p688_p0 = pnand %p695_p13, %p944_p4  ;;  %s144_s4 = int_to_ptr.vmem [resolvable:$true] %s143_s4 }
  0x15   : > { %p673_p1 = scmp.ge.s32.totalorder %s884_s14, 1  ;;  %p148_p2 = scmp.lt.s32.totalorder %s884_s14, 3 }
  0x16   : > { %s129_s6 = scalar_lea.sflag [#allocation3], %s128_s25 }
  0x17   : > { %690 = dma.hbm_to_vmem [thread:$0]  (!%p688_p0), %s142_s5, 512, %s144_s4, %s129_s6  }
  0x18   : > { %p149_p3 = pnand %p673_p1, %p148_p2 }
  0x19   : > { %s977_s7 = sand.u32 (!%p149_p3), 1, %s868_s10  }
  0x1a   : > { %152 = sbr.rel (%p149_p3) target bundleno = 182 (0xb6), region = 28  ;;  %s674_s8 = sshll.u32 (!%p149_p3), %s977_s7, 5 }
  0x1b   : > { %s155_s15 = scalar_lea.sflag (!%p149_p3), [#allocation3], %s977_s7  ;;  %s158_s16 = scalar_lea.vmem (!%p149_p3), [#allocation2], %s674_s8 }
  0x1f   : > { %855 = dma.done.wait (%p950_p8), %s155_s15, 512  }
  0x20   : > { %857 = vsyncadd (%p950_p8), %s155_s15, 4294966784  ;;  %v886_v0 = vmov 0   ;;  %v509_v1 = vld [vmem:[%s1239_s1] sm:$0xf]  ;;  %v990_v2 = vld [vmem:[%s158_s16] sm:$0xff]  ;;  %vm1241_vm0 = vcmask 1043456  }
  0x21   : > { %747 = vset.pattern.permute.xlu0 %v886_v0  ;;  %v992_v3 = vld [vmem:[%s158_s16 + $0x8] sm:$0xff]  ;;  %v994_v4 = vld [vmem:[%s158_s16 + $0x10] sm:$0xff]  ;;  %v996_v5 = vld [vmem:[%s158_s16 + $0x18] sm:$0xff]  ;;  %190 = vst [vmem:[#allocation1] ss:$2 sm:$0xff] %v990_v2  ;;  %s682_s20 = sshll.u32 %s876_s12, 5 }
  0x22   : > { %512 = vperm.xlu0 %747, %v509_v1   ;;  %192 = vst [vmem:[#allocation1 + $0x10] ss:$2 sm:$0xff] %v992_v3  ;;  %s577_s26 = scalar_lea.hbm %s1240_s2, %s682_s20  ;;  %s179_s27 = scalar_lea.vmem [#allocation5], %s674_s8 }
  0x23   : > { %194 = vst [vmem:[#allocation1 + $0x20] ss:$2 sm:$0xff] %v994_v4  ;;  %s579_s12 = sshll.u32 %s179_s27, 4  ;;  %s581_s28 = sshll.u32 %s577_s26, 4  ;;  %s580_s12 = int_to_ptr.vmem [resolvable:$true] %s579_s12  ;;  %s582_s28 = int_to_ptr.hbm [resolvable:$true] %s581_s28 }
  0x24   : > { %196 = vst [vmem:[#allocation1 + $0x30] ss:$2 sm:$0xff] %v996_v5  ;;  %s564_s29 = scalar_lea.sflag [#allocation4], %s977_s7  ;;  %s816_s30 = sshra.s32 %s582_s28, 4  ;;  %s817_s30 = int_to_ptr.hbm [resolvable:$true] %s816_s30 }
  0x25   : > { %s818_s3 = scalar_lea.hbm %s817_s30, 32  ;;  %s822_s6 = scalar_lea.hbm %s1240_s2, 64 }
  0x26   : > { %p819_p4 = scmp.ne.s32.totalorder %s817_s30, %s818_s3  ;;  %p823_p7 = scmp.lt.s32.totalorder %s817_s30, %s1240_s2 }
  0x27   : > { %p824_p8 = scmp.lt.s32.totalorder %s822_s6, %s818_s3 }
  0x28   : > { %v198_v6 = vld.sshfl [vmem:[#allocation1 + $0x8] sm:$0xff pattern:$0x75316420]  ;;  %v197_v9 = vld.sshfl [vmem:[#allocation1] sm:$0xff pattern:$0x75316420]  ;;  %p820_p5 = pnand %p819_p4, %p954_p9 }
  0x29   : > { %v200_v7 = vld.sshfl [vmem:[#allocation1 + $0x18] sm:$0xff pattern:$0x75316420]  ;;  %v221_v8 = vsel %vm1241_vm0, %v198_v6, 0.0  ;;  %v214_v15 = vsel %vm1241_vm0, %v197_v9, 0.0  ;;  %p825_p10 = por %p824_p8, %p823_p7 }
  0x2a   : > { %v199_v10 = vld.sshfl [vmem:[#allocation1 + $0x10] sm:$0xff pattern:$0x75316420]  ;;  %v201_v11 = vld.sshfl [vmem:[#allocation1 + $0x20] sm:$0xff pattern:$0x75316420]  ;;  %p821_p6 = pneg %p820_p5 }
  0x2b   : > { %v202_v12 = vld.sshfl [vmem:[#allocation1 + $0x28] sm:$0xff pattern:$0x75316420]  ;;  %v203_v13 = vld.sshfl [vmem:[#allocation1 + $0x30] sm:$0xff pattern:$0x75316420] }
  0x2c   : > { %v204_v14 = vld.sshfl [vmem:[#allocation1 + $0x38] sm:$0xff pattern:$0x75316420]  ;;  %v222_v16 = vrot.slane %v221_v8, 4  ;;  %v228_v17 = vsel %vm1241_vm0, %v199_v10, 0.0  ;;  %v235_v18 = vsel %vm1241_vm0, %v200_v7, 0.0  ;;  %p826_p13 = pnand %p825_p10, %p821_p6 }
  0x2d   : > { %v215_v19 = vrot.slane %v214_v15, 4  ;;  %v229_v20 = vrot.slane %v228_v17, 4  ;;  %v236_v21 = vrot.slane %v235_v18, 4  ;;  %v242_v22 = vsel %vm1241_vm0, %v201_v11, 0.0 }
  0x2e   : > { %v223_v23 = vadd.f32 %v222_v16, %v221_v8  ;;  %v243_v24 = vrot.slane %v242_v22, 4  ;;  %v249_v25 = vsel %vm1241_vm0, %v202_v12, 0.0  ;;  %v256_v26 = vsel %vm1241_vm0, %v203_v13, 0.0 }
  0x2f   : > { %v216_v27 = vadd.f32 %v215_v19, %v214_v15  ;;  %v230_v28 = vadd.f32 %v229_v20, %v228_v17  ;;  %v237_v29 = vadd.f32 %v236_v21, %v235_v18  ;;  %v250_v30 = vrot.slane %v249_v25, 4 }
  0x30   : > { %v224_v31 = vrot.slane %v223_v23, 2  ;;  %v244_v32 = vadd.f32 %v243_v24, %v242_v22  ;;  %v257_v33 = vrot.slane %v256_v26, 4  ;;  %v263_v34 = vsel %vm1241_vm0, %v204_v14, 0.0 }
  0x31   : > { %v217_v35 = vrot.slane %v216_v27, 2  ;;  %v231_v36 = vrot.slane %v230_v28, 2  ;;  %v238_v37 = vrot.slane %v237_v29, 2  ;;  %v251_v38 = vadd.f32 %v250_v30, %v249_v25 }
  0x32   : > { %v225_v39 = vadd.f32 %v224_v31, %v223_v23  ;;  %v245_v40 = vrot.slane %v244_v32, 2  ;;  %v258_v41 = vadd.f32 %v257_v33, %v256_v26  ;;  %v264_v42 = vrot.slane %v263_v34, 4 }
  0x33   : > { %v218_v43 = vadd.f32 %v217_v35, %v216_v27  ;;  %v232_v44 = vadd.f32 %v231_v36, %v230_v28  ;;  %v239_v45 = vadd.f32 %v238_v37, %v237_v29  ;;  %v252_v46 = vrot.slane %v251_v38, 2 }
  0x34   : > { %v226_v47 = vrot.slane %v225_v39, 1  ;;  %v246_v48 = vadd.f32 %v245_v40, %v244_v32  ;;  %v259_v49 = vrot.slane %v258_v41, 2  ;;  %v265_v50 = vadd.f32 %v264_v42, %v263_v34 }
  0x35   : > { %v219_v51 = vrot.slane %v218_v43, 1  ;;  %v233_v52 = vrot.slane %v232_v44, 1  ;;  %v240_v53 = vrot.slane %v239_v45, 1  ;;  %v253_v54 = vadd.f32 %v252_v46, %v251_v38 }
  0x36   : > { %v227_v55 = vadd.f32 %v226_v47, %v225_v39  ;;  %v247_v56 = vrot.slane %v246_v48, 1  ;;  %v260_v57 = vadd.f32 %v259_v49, %v258_v41  ;;  %v266_v58 = vrot.slane %v265_v50, 2 }
  0x37   : > { %v220_v59 = vadd.f32 %v219_v51, %v218_v43  ;;  %v234_v60 = vadd.f32 %v233_v52, %v232_v44  ;;  %v241_v61 = vadd.f32 %v240_v53, %v239_v45  ;;  %v254_v62 = vrot.slane %v253_v54, 1 }
  0x38   : > { %v248_v63 = vadd.f32 %v247_v56, %v246_v48  ;;  %v261_v0 = vrot.slane %v260_v57, 1  ;;  %v267_v1 = vadd.f32 %v266_v58, %v265_v50  ;;  %v271_v6 = vmul.f32 0.25, %v227_v55 }
  0x39   : > { %v255_v7 = vadd.f32 %v254_v62, %v253_v54  ;;  %v270_v8 = vmul.f32 0.25, %v220_v59  ;;  %v272_v9 = vmul.f32 0.25, %v234_v60  ;;  %v273_v10 = vmul.f32 0.25, %v241_v61 }
  0x3a   : > { %v262_v11 = vadd.f32 %v261_v0, %v260_v57  ;;  %v268_v12 = vrot.slane %v267_v1, 1  ;;  %v286_v13 = vrot.slane %v271_v6, 4  ;;  %v274_v14 = vmul.f32 0.25, %v248_v63 }
  0x3b   : > { %v275_v15 = vmul.f32 0.25, %v255_v7  ;;  %v287_v16 = vrot.slane %v273_v10, 4 }
  0x3c   : > { %v269_v17 = vadd.f32 %v268_v12, %v267_v1  ;;  %v290_v18 = vsel %vm1241_vm0, %v270_v8, %v286_v13  ;;  %v276_v22 = vmul.f32 0.25, %v262_v11 }
  0x3d   : > { %v288_v19 = vrot.slane %v275_v15, 4  ;;  %v291_v20 = vsel %vm1241_vm0, %v272_v9, %v287_v16  ;;  %v1013_v21 = vsub.f32 %v990_v2, %v290_v18 }
  0x3e   : > { %v277_v23 = vmul.f32 0.25, %v269_v17  ;;  %v1016_v24 = vsub.f32 %v992_v3, %v291_v20 }
  0x3f   : > { %v292_v25 = vsel %vm1241_vm0, %v274_v14, %v288_v19  ;;  %v302_v26 = vmul.f32 %v1013_v21, %v1013_v21 }
  0x40   : > { %v289_v27 = vrot.slane %v277_v23, 4  ;;  %v1022_v28 = vsub.f32 %v994_v4, %v292_v25  ;;  %v303_v29 = vmul.f32 %v1016_v24, %v1016_v24 }
  0x41   : > { %310 = vst [vmem:[#allocation1] ss:$2 sm:$0xff] %v302_v26 }
  0x42   : > { %v293_v2 = vsel %vm1241_vm0, %v276_v22, %v289_v27  ;;  %v304_v30 = vmul.f32 %v1022_v28, %v1022_v28  ;;  %312 = vst [vmem:[#allocation1 + $0x10] ss:$2 sm:$0xff] %v303_v29 }
  0x43   : > { %v1030_v3 = vsub.f32 %v996_v5, %v293_v2 }
  0x44   : > { %314 = vst [vmem:[#allocation1 + $0x20] ss:$2 sm:$0xff] %v304_v30 }
  0x45   : > { %v305_v31 = vmul.f32 %v1030_v3, %v1030_v3 }
  0x47   : > { %316 = vst [vmem:[#allocation1 + $0x30] ss:$2 sm:$0xff] %v305_v31 }
  0x48   : > { %v317_v4 = vld.sshfl [vmem:[#allocation1] sm:$0xff pattern:$0x75316420]  ;;  %v318_v32 = vld.sshfl [vmem:[#allocation1 + $0x8] sm:$0xff pattern:$0x75316420] }
  0x49   : > { %v319_v33 = vld.sshfl [vmem:[#allocation1 + $0x10] sm:$0xff pattern:$0x75316420]  ;;  %v320_v34 = vld.sshfl [vmem:[#allocation1 + $0x18] sm:$0xff pattern:$0x75316420] }
  0x4a   : > { %v333_v35 = vsel %vm1241_vm0, %v317_v4, 0.0  ;;  %v340_v36 = vsel %vm1241_vm0, %v318_v32, 0.0  ;;  %v347_v37 = vsel %vm1241_vm0, %v319_v33, 0.0  ;;  %v354_v38 = vsel %vm1241_vm0, %v320_v34, 0.0 }
  0x4b   : > { %v321_v39 = vld.sshfl [vmem:[#allocation1 + $0x20] sm:$0xff pattern:$0x75316420]  ;;  %v322_v5 = vld.sshfl [vmem:[#allocation1 + $0x28] sm:$0xff pattern:$0x75316420] }
  0x4c   : > { %v334_v40 = vrot.slane %v333_v35, 4  ;;  %v341_v41 = vrot.slane %v340_v36, 4  ;;  %v348_v42 = vrot.slane %v347_v37, 4  ;;  %v355_v43 = vrot.slane %v354_v38, 4 }
  0x4d   : > { %v361_v44 = vsel %vm1241_vm0, %v321_v39, 0.0  ;;  %v368_v45 = vsel %vm1241_vm0, %v322_v5, 0.0 }
  0x4e   : > { %v323_v46 = vld.sshfl [vmem:[#allocation1 + $0x30] sm:$0xff pattern:$0x75316420]  ;;  %v324_v47 = vld.sshfl [vmem:[#allocation1 + $0x38] sm:$0xff pattern:$0x75316420]  ;;  %v335_v48 = vadd.f32 %v334_v40, %v333_v35  ;;  %v342_v49 = vadd.f32 %v341_v41, %v340_v36  ;;  %v349_v50 = vadd.f32 %v348_v42, %v347_v37  ;;  %v356_v51 = vadd.f32 %v355_v43, %v354_v38 }
  0x4f   : > { %v362_v52 = vrot.slane %v361_v44, 4  ;;  %v369_v53 = vrot.slane %v368_v45, 4  ;;  %v375_v54 = vsel %vm1241_vm0, %v323_v46, 0.0  ;;  %v382_v55 = vsel %vm1241_vm0, %v324_v47, 0.0 }
  0x50   : > { %v336_v56 = vrot.slane %v335_v48, 2  ;;  %v343_v57 = vrot.slane %v342_v49, 2  ;;  %v350_v58 = vrot.slane %v349_v50, 2  ;;  %v357_v59 = vrot.slane %v356_v51, 2 }
  0x51   : > { %v363_v60 = vadd.f32 %v362_v52, %v361_v44  ;;  %v370_v61 = vadd.f32 %v369_v53, %v368_v45  ;;  %v376_v62 = vrot.slane %v375_v54, 4  ;;  %v383_v63 = vrot.slane %v382_v55, 4 }
  0x52   : > { %v337_v0 = vadd.f32 %v336_v56, %v335_v48  ;;  %v344_v1 = vadd.f32 %v343_v57, %v342_v49  ;;  %v351_v6 = vadd.f32 %v350_v58, %v349_v50  ;;  %v358_v7 = vadd.f32 %v357_v59, %v356_v51 }
  0x53   : > { %v364_v8 = vrot.slane %v363_v60, 2  ;;  %v371_v9 = vrot.slane %v370_v61, 2  ;;  %v377_v10 = vadd.f32 %v376_v62, %v375_v54  ;;  %v384_v11 = vadd.f32 %v383_v63, %v382_v55 }
  0x54   : > { %v338_v12 = vrot.slane %v337_v0, 1  ;;  %v345_v13 = vrot.slane %v344_v1, 1  ;;  %v352_v14 = vrot.slane %v351_v6, 1  ;;  %v359_v15 = vrot.slane %v358_v7, 1 }
  0x55   : > { %v365_v16 = vadd.f32 %v364_v8, %v363_v60  ;;  %v372_v17 = vadd.f32 %v371_v9, %v370_v61  ;;  %v378_v18 = vrot.slane %v377_v10, 2  ;;  %v385_v19 = vrot.slane %v384_v11, 2 }
  0x56   : > { %v339_v20 = vadd.f32 %v338_v12, %v337_v0  ;;  %v346_v22 = vadd.f32 %v345_v13, %v344_v1  ;;  %v360_v23 = vadd.f32 %v359_v15, %v358_v7  ;;  %v353_v2 = vadd.f32 %v352_v14, %v351_v6 }
  0x57   : > { %v366_v25 = vrot.slane %v365_v16, 1  ;;  %v373_v26 = vrot.slane %v372_v17, 1  ;;  %v379_v27 = vadd.f32 %v378_v18, %v377_v10  ;;  %v386_v29 = vadd.f32 %v385_v19, %v384_v11 }
  0x58   : > { %v389_v30 = vmul.f32 0.25, %v339_v20  ;;  %v390_v31 = vmul.f32 0.25, %v346_v22  ;;  %v392_v35 = vmul.f32 0.25, %v360_v23  ;;  %v391_v39 = vmul.f32 0.25, %v353_v2 }
  0x59   : > { %v367_v4 = vadd.f32 %v366_v25, %v365_v16  ;;  %v374_v32 = vadd.f32 %v373_v26, %v372_v17  ;;  %v380_v33 = vrot.slane %v379_v27, 1  ;;  %v387_v34 = vrot.slane %v386_v29, 1 }
  0x5a   : > { %v1042_v5 = vadd.f32 1e-05, %v389_v30  ;;  %v398_v41 = vadd.f32 1e-05, %v390_v31  ;;  %v1044_v43 = vadd.f32 1e-05, %v392_v35 }
  0x5b   : > { %v381_v36 = vadd.f32 %v380_v33, %v379_v27  ;;  %v388_v37 = vadd.f32 %v387_v34, %v386_v29  ;;  %v394_v38 = vmul.f32 0.25, %v374_v32  ;;  %v393_v40 = vmul.f32 0.25, %v367_v4 }
  0x5c   : > { %v1048_v46 = vadd.f32 1e-05, %v391_v39  ;;  %748 = vrsqrt.f32 %v1042_v5  ;;  %vm421_vm1 = vweird.f32 %v398_v41  ;;  %vm441_vm3 = vweird.f32 %v1044_v43 }
  0x5d   : > { %v395_v42 = vmul.f32 0.25, %v381_v36  ;;  %v396_v44 = vmul.f32 0.25, %v388_v37  ;;  %v1046_v45 = vadd.f32 1e-05, %v394_v38  ;;  %v1051_v47 = vadd.f32 1e-05, %v393_v40 }
  0x5e   : > { %750 = vrsqrt.f32 %v398_v41  ;;  %vm411_vm5 = vweird.f32 %v1042_v5  ;;  %vm431_vm10 = vweird.f32 %v1048_v46 }
  0x5f   : > { %v1053_v48 = vadd.f32 1e-05, %v395_v42  ;;  %752 = vrsqrt.f32 %v1044_v43  ;;  %v1056_v49 = vadd.f32 1e-05, %v396_v44  ;;  %vm461_vm7 = vweird.f32 %v1046_v45 }
  0x60   : > { %754 = vrsqrt.f32 %v1046_v45 }
  0x61   : > { %756 = vrsqrt.f32 %v1048_v46  ;;  %vm481_vm11 = vweird.f32 %v1056_v49 }
  0x62   : > { %758 = vrsqrt.f32 %v1051_v47  ;;  %v1061_v50 = vpop.eup %748 }
  0x63   : > { %760 = vrsqrt.f32 %v1053_v48  ;;  %v406_v61 = vmul.f32 %v1061_v50, %v1042_v5  ;;  %vm412_vm6 = vweird.f32 %v1061_v50 }
  0x64   : > { %v1064_v51 = vpop.eup %750  ;;  %762 = vrsqrt.f32 %v1056_v49 }
  0x65   : > { %v1067_v52 = vpop.eup %752  ;;  %v416_v56 = vmul.f32 %v1064_v51, %v398_v41  ;;  %v407_v9 = vmul.f32 %v1061_v50, %v406_v61  ;;  %vm422_vm2 = vweird.f32 %v1064_v51 }
  0x66   : > { %v1069_v53 = vpop.eup %754  ;;  %v436_v57 = vmul.f32 %v1067_v52, %v1044_v43  ;;  %vm442_vm4 = vweird.f32 %v1067_v52  ;;  %vm1112_vm9 = vmor %vm421_vm1, %vm422_vm2  ;;  %vm451_vm1 = vweird.f32 %v1051_v47 }
  0x67   : > { %v1071_v54 = vpop.eup %756  ;;  %v456_v59 = vmul.f32 %v1069_v53, %v1046_v45  ;;  %v417_v62 = vmul.f32 %v1064_v51, %v416_v56  ;;  %v408_v18 = vmul.f32 0.5, %v407_v9  ;;  %vm462_vm8 = vweird.f32 %v1069_v53  ;;  %vm1126_vm14 = vmor %vm441_vm3, %vm442_vm4 }
  0x68   : > { %v1073_v55 = vpop.eup %758  ;;  %v426_v63 = vmul.f32 %v1071_v54, %v1048_v46  ;;  %v437_v0 = vmul.f32 %v1067_v52, %v436_v57  ;;  %vm432_vm13 = vweird.f32 %v1071_v54  ;;  %vm1131_vm15 = vmor %vm461_vm7, %vm462_vm8  ;;  %vm471_vm4 = vweird.f32 %v1053_v48 }
  0x69   : > { %v1078_v58 = vpop.eup %760  ;;  %v446_v1 = vmul.f32 %v1073_v55, %v1051_v47  ;;  %v457_v6 = vmul.f32 %v1069_v53, %v456_v59  ;;  %v418_v11 = vmul.f32 0.5, %v417_v62  ;;  %v409_v29 = vsub.f32 1.5, %v408_v18  ;;  %vm1147_vm3 = vmor %vm411_vm5, %vm412_vm6 }
  0x6a   : > { %v1082_v60 = vpop.eup %762  ;;  %v466_v7 = vmul.f32 %v1078_v58, %v1053_v48  ;;  %v427_v12 = vmul.f32 %v1071_v54, %v426_v63  ;;  %v438_v13 = vmul.f32 0.5, %v437_v0  ;;  %vm452_vm2 = vweird.f32 %v1073_v55  ;;  %vm1161_vm8 = vmor %vm431_vm10, %vm432_vm13 }
  0x6b   : > { %v476_v8 = vmul.f32 %v1082_v60, %v1056_v49  ;;  %v447_v14 = vmul.f32 %v1073_v55, %v446_v1  ;;  %v458_v15 = vmul.f32 0.5, %v457_v6  ;;  %v419_v19 = vsub.f32 1.5, %v418_v11  ;;  %vm1169_vm5 = vmor %vm451_vm1, %vm452_vm2 }
  0x6c   : > { %v467_v16 = vmul.f32 %v1078_v58, %v466_v7  ;;  %v428_v20 = vmul.f32 0.5, %v427_v12  ;;  %v439_v22 = vsub.f32 1.5, %v438_v13  ;;  %vm482_vm12 = vweird.f32 %v1082_v60 }
  0x6d   : > { %v477_v10 = vmul.f32 %v1082_v60, %v476_v8  ;;  %v448_v23 = vmul.f32 0.5, %v447_v14  ;;  %v459_v25 = vsub.f32 1.5, %v458_v15  ;;  %v420_v30 = vmul.f32 %v1064_v51, %v419_v19  ;;  %vm1138_vm0 = vmor %vm481_vm11, %vm482_vm12 }
  0x6e   : > { %v468_v26 = vmul.f32 0.5, %v467_v16  ;;  %v429_v31 = vsub.f32 1.5, %v428_v20  ;;  %v440_v4 = vmul.f32 %v1067_v52, %v439_v22  ;;  %v410_v39 = vmul.f32 %v1061_v50, %v409_v29 }
  0x6f   : > { %v478_v17 = vmul.f32 0.5, %v477_v10  ;;  %v449_v33 = vsub.f32 1.5, %v448_v23  ;;  %v460_v34 = vmul.f32 %v1069_v53, %v459_v25  ;;  %vm472_vm7 = vweird.f32 %v1078_v58 }
  0x70   : > { %v469_v36 = vsub.f32 1.5, %v468_v26  ;;  %v424_v41 = vsel %vm1112_vm9, %v1064_v51, %v420_v30  ;;  %v430_v42 = vmul.f32 %v1071_v54, %v429_v31  ;;  %v444_v43 = vsel %vm1126_vm14, %v1067_v52, %v440_v4  ;;  %vm473_vm6 = vmor %vm471_vm4, %vm472_vm7 }
  0x71   : > { %v479_v27 = vsub.f32 1.5, %v478_v17  ;;  %v450_v44 = vmul.f32 %v1073_v55, %v449_v33  ;;  %v464_v47 = vsel %vm1131_vm15, %v1069_v53, %v460_v34  ;;  %v414_v49 = vsel %vm1147_vm3, %v1061_v50, %v410_v39 }
  0x72   : > { %v470_v46 = vmul.f32 %v1078_v58, %v469_v36  ;;  %v493_v51 = vrot.slane %v424_v41, 4  ;;  %v494_v52 = vrot.slane %v444_v43, 4  ;;  %v495_v56 = vrot.slane %v464_v47, 4 }
  0x73   : > { %v480_v37 = vmul.f32 %v1082_v60, %v479_v27  ;;  %v434_v59 = vsel %vm1161_vm8, %v1071_v54, %v430_v42  ;;  %v454_v53 = vsel %vm1169_vm5, %v1073_v55, %v450_v44 }
  0x74   : > { %v474_v61 = vsel %vm473_vm6, %v1078_v58, %v470_v46 }
  0x75   : > { %v484_v48 = vsel %vm1138_vm0, %v1082_v60, %v480_v37  ;;  %v887_v60 = vmov 839922192   ;;  %vm1260_vm0 = vcmask 1043456  }
  0x76   : > { %v496_v57 = vrot.slane %v484_v48, 4  ;;  %v515_v62 = vunpack.c.l.s4 %v887_v60  ;;  %v497_v63 = vsel %vm1260_vm0, %v414_v49, %v493_v51  ;;  %vm1261_vm9 = vmmov %vm1260_vm0 }
  0x77   : > { %v498_v50 = vsel %vm1261_vm9, %v434_v59, %v494_v52  ;;  %vm1262_vm10 = vmmov %vm1260_vm0  ;;  %v505_v7 = vmul.f32 %v497_v63, %v1013_v21 }
  0x78   : > { %v499_v0 = vsel %vm1262_vm10, %v454_v53, %v495_v56  ;;  %vm1263_vm11 = vmmov %vm1260_vm0  ;;  %v516_v6 = vunpack.c.0.s8 %v515_v62  ;;  %v506_v54 = vmul.f32 %v498_v50, %v1016_v24 }
  0x79   : > { %v500_v1 = vsel %vm1263_vm11, %v474_v61, %v496_v57  ;;  %v507_v8 = vmul.f32 %v499_v0, %v1022_v28 }
  0x7a   : > { %v508_v55 = vmul.f32 %v500_v1, %v1030_v3 }
  0x94   : > { %v513_v58 = vpop.permute.xlu0 %512 }
  0x95   : > { %v517_v9 = vperm.slane %v513_v58, %v516_v6 }
  0x97   : > { %v519_v10 = vmul.f32 %v517_v9, %v505_v7  ;;  %v520_v11 = vmul.f32 %v517_v9, %v506_v54  ;;  %v521_v12 = vmul.f32 %v517_v9, %v507_v8  ;;  %v522_v13 = vmul.f32 %v517_v9, %v508_v55 }
  0x99   : > { %v523_v14 = vmul.f32 %v519_v10, %v519_v10  ;;  %v524_v15 = vmul.f32 %v520_v11, %v520_v11  ;;  %v525_v16 = vmul.f32 %v521_v12, %v521_v12  ;;  %v526_v17 = vmul.f32 %v522_v13, %v522_v13 }
  0x9b   : > { %v527_v18 = vmul.f32 %v523_v14, %v519_v10  ;;  %v528_v19 = vmul.f32 %v524_v15, %v520_v11  ;;  %v529_v20 = vmul.f32 %v525_v16, %v521_v12  ;;  %v530_v21 = vmul.f32 %v526_v17, %v522_v13 }
  0x9d   : > { %v531_v22 = vmul.f32 0.044715, %v527_v18  ;;  %v532_v24 = vmul.f32 0.044715, %v528_v19  ;;  %v533_v28 = vmul.f32 0.044715, %v529_v20 }
  0x9e   : > { %v534_v23 = vmul.f32 0.044715, %v530_v21 }
  0x9f   : > { %v535_v3 = vadd.f32 %v531_v22, %v519_v10  ;;  %v536_v25 = vadd.f32 %v532_v24, %v520_v11  ;;  %v537_v26 = vadd.f32 %v533_v28, %v521_v12 }
  0xa0   : > { %v538_v27 = vadd.f32 %v534_v23, %v522_v13 }
  0xa1   : > { %v539_v29 = vmul.f32 0.7978846, %v535_v3  ;;  %v540_v2 = vmul.f32 0.7978846, %v536_v25  ;;  %v541_v30 = vmul.f32 0.7978846, %v537_v26 }
  0xa2   : > { %v542_v31 = vmul.f32 0.7978846, %v538_v27 }
  0xa3   : > { %764 = vtanh.f32 %v539_v29 }
  0xa4   : > { %766 = vtanh.f32 %v540_v2 }
  0xa5   : > { %768 = vtanh.f32 %v541_v30 }
  0xa6   : > { %770 = vtanh.f32 %v542_v31 }
  0xa9   : > { %v765_v4 = vpop.eup %764 }
  0xaa   : > { %v767_v32 = vpop.eup %766  ;;  %v547_v33 = vadd.f32 1.0, %v765_v4 }
  0xab   : > { %v769_v34 = vpop.eup %768  ;;  %v548_v35 = vadd.f32 1.0, %v767_v32 }
  0xac   : > { %v771_v36 = vpop.eup %770  ;;  %v549_v37 = vadd.f32 1.0, %v769_v34  ;;  %v551_v38 = vmul.f32 0.5, %v547_v33 }
  0xad   : > { %v550_v39 = vadd.f32 1.0, %v771_v36  ;;  %v552_v40 = vmul.f32 0.5, %v548_v35 }
  0xae   : > { %v553_v41 = vmul.f32 0.5, %v549_v37  ;;  %v555_v42 = vmul.f32 %v551_v38, %v519_v10 }
  0xaf   : > { %v554_v5 = vmul.f32 0.5, %v550_v39  ;;  %v556_v43 = vmul.f32 %v552_v40, %v520_v11 }
  0xb0   : > { %v557_v44 = vmul.f32 %v553_v41, %v521_v12  ;;  %559 = vst [vmem:[%s179_s27] sm:$0xff] %v555_v42 }
  0xb1   : > { %v558_v45 = vmul.f32 %v554_v5, %v522_v13  ;;  %560 = vst [vmem:[%s179_s27 + $0x8] sm:$0xff] %v556_v43 }
  0xb2   : > { %561 = vst [vmem:[%s179_s27 + $0x10] sm:$0xff] %v557_v44 }
  0xb3   : > { %562 = vst [vmem:[%s179_s27 + $0x18] sm:$0xff] %v558_v45 }
  0xb4   : > { %829 = shalt.err (!%p826_p13)
}
  0xb5   : > { %685 = dma.vmem_to_hbm [thread:$0]  (%p954_p9), %s580_s12, 512, %s582_s28, %s564_s29  }
  0xb6 PF: > { %s593_s7 = sand.u32 1, %s864_s9   ;;  %p692_p0 = pnand %p669_p12, %p961_p11 }
  0xb7   : > { %s594_s16 = scalar_lea.sflag [#allocation4], %s593_s7 }
  0xb8   : > { %p693_p1 = pneg %p692_p0 }
  0xba   : > { %859 = dma.done.wait (%p693_p1), %s594_s16, 512  }
  0xbb   : > { %861 = vsyncadd (%p693_p1), %s594_s16, 4294966784  ;;  %s18_s14 = sadd.s32 1, %s884_s14   ;;  %s1264_s9 = smov %s868_s10 }
  0xbc   : > { %p15_p2 = scmp.ge.s32.totalorder %s18_s14, 4   ;;  %s1265_s10 = smov %s872_s11 }
  0xbd   : > { %s1266_s11 = smov %s959_s23  ;;  %s1267_s12 = smov %s880_s13 }
  0xbe   : > { %s1268_s13 = smov %s1270_s17  ;;  %17 = sbr.rel (!%p15_p2) target bundleno = 6 (0x6), region = 79 }
  0xc3   :  { %600 = vsyncpa [#allocation3], 1 }
  0xc4   :  { %602 = vsyncpa [#allocation3 + $0x1], 1 }
  0xc5   :  { %603 = vsyncpa [#allocation4], 1 }
  0xc6   :  { %605 = vsyncpa [#allocation4 + $0x1], 1 }

</bundles_post_ra>
